<compile_context>
chip_gen: v6e
topology: v6e:2x2x1
jax: 0.10.0
libtpu: 0.0.40
codegen_flags: <defaults>
</compile_context>

<pallas_src>
import jax
import jax.numpy as jnp
from jax.experimental import pallas as pl
from jax.experimental.pallas import tpu as pltpu


def cnn_mlp_kernel(x_ref, w_ref, bc_ref, v_ref, bm_ref, out_ref):
    """Fused Conv1d(1->nhid, k=3) + ReLU + Linear(nhid->1) for TB batch rows.

    x_ref   : (TB, T_pad)   signal block, batch on sublanes, time on lanes
    w_ref   : (nhid, 3)     conv weights (channel on sublanes, tap on lanes)
    bc_ref  : (nhid, 1)     conv bias
    v_ref   : (nhid, 1)     linear weight column
    bm_ref  : (1,)          linear bias (SMEM scalar)
    out_ref : (TB, T_pad)   lane-dense padded output block
    """
    t_pad = x_ref.shape[-1]

    x0 = x_ref[...]                                        # x[b, t]
    # Shifted taps via XLU rotations (shift = t_pad-1/-2  ==  -1/-2 mod t_pad);
    # the wrapped tail lanes are garbage but get sliced off in the wrapper.
    x1 = pltpu.roll(x0, shift=t_pad - 1, axis=1)           # x[b, t+1]
    x2 = pltpu.roll(x0, shift=t_pad - 2, axis=1)           # x[b, t+2]

    w = w_ref[...]                                         # (nhid, 3)
    bc = bc_ref[...]                                       # (nhid, 1)
    v = v_ref[...]                                         # (nhid, 1)

    # Conv taps as rank-1 broadcasts on the VPU: (1,nhid,1) * (TB,1,T_pad).
    # TODO(synk): for large nhid*T offload this 3-tap contraction to the MXU
    # (dot over k=3) and/or chunk the nhid axis to bound vreg pressure.
    pre = (w[:, 0:1][None] * x0[:, None, :]
           + w[:, 1:2][None] * x1[:, None, :]
           + w[:, 2:3][None] * x2[:, None, :]
           + bc[None])                                     # (TB, nhid, T_pad)
    act = jnp.maximum(pre, 0.0)                            # ReLU

    # Linear(nhid -> 1): sublane reduction over nhid, scalar bias from SMEM.
    out_ref[...] = jnp.sum(act * v[None], axis=1) + bm_ref[0]


def cnn_forward(x, conv_w, conv_b, mlp_w, mlp_b, *, batch_block=8):
    """x: (B, T_in, 1) float32 — same input layout as the PyTorch module."""
    B, T_in, _ = x.shape
    nhid = conv_w.shape[0]
    T_out = T_in - 2

    # Sublane-dense batch blocking and lane-dense (multiple-of-128) time axis.
    TB = batch_block
    B_pad = ((B + TB - 1) // TB) * TB
    T_pad = ((T_in + 127) // 128) * 128

    xs = x[..., 0]                                              # (B, T_in)
    xs = jnp.pad(xs, ((0, B_pad - B), (0, T_pad - T_in)))       # (B_pad, T_pad)

    w = conv_w[:, 0, :]                                         # (nhid, 3)
    bc = conv_b.reshape(nhid, 1)
    v = mlp_w.reshape(nhid, 1)
    bm = mlp_b.reshape(1,)

    # TODO(synk): for very long sequences, tile T_pad with a 2-element halo and
    # size the tile for the per-generation VMEM budget (64 MiB on v7x).
    # TODO(synk): on v6e/v7x the elementwise path can run in bf16 (2x VALU,
    # keep nhid reduction in f32); kept f32 throughout here for v5e safety.
    z = pl.pallas_call(
        cnn_mlp_kernel,
        out_shape=jax.ShapeDtypeStruct((B_pad, T_pad), jnp.float32),
        grid=(B_pad // TB,),
        in_specs=[
            pl.BlockSpec((TB, T_pad), lambda b: (b, 0)),         # signal block
            pl.BlockSpec((nhid, 3), lambda b: (0, 0)),           # resident weights
            pl.BlockSpec((nhid, 1), lambda b: (0, 0)),
            pl.BlockSpec((nhid, 1), lambda b: (0, 0)),
            pl.BlockSpec(memory_space=pltpu.MemorySpace.SMEM),   # scalar mlp bias
        ],
        out_specs=pl.BlockSpec((TB, T_pad), lambda b: (b, 0)),
        compiler_params=pltpu.CompilerParams(
            dimension_semantics=("parallel",)),
    )(xs, w, bc, v, bm)

    z = z[:B, :T_out]                                            # drop padding

    # Reproduce PyTorch's  y.view(-1, D) ... y.view(T, B, -1).transpose(0, 1)
    # re-indexing verbatim (it interleaves batch and time when B not in {1, T};
    # that is exactly what the reference module computes, so it is preserved).
    out = z.reshape(B * T_out).reshape(T_out, B, 1)
    out = jnp.transpose(out, (1, 0, 2))                          # (B, T_out, 1)
    return out


def ref_forward(x, conv_w, conv_b, mlp_w, mlp_b):
    """Pure-JAX reference mirroring the PyTorch forward pass exactly."""
    B, T_in, _ = x.shape
    nhid = conv_w.shape[0]
    T_out = T_in - 2
    xs = x[..., 0]
    taps = jnp.stack([xs[:, k:k + T_out] for k in range(3)], axis=-1)   # (B,T_out,3)
    y = jnp.einsum("btk,dk->btd", taps, conv_w[:, 0, :]) + conv_b       # (B,T_out,nhid)
    y = jnp.maximum(y, 0.0)
    z = y.reshape(-1, nhid) @ mlp_w.T + mlp_b                           # (B*T_out, 1)
    z = z.reshape(T_out, B, 1)
    return jnp.transpose(z, (1, 0, 2))


if __name__ == "__main__":
    B, T_in, nhid = 2, 16, 32
    key = jax.random.PRNGKey(0)
    k1, k2, k3, k4, k5 = jax.random.split(key, 5)

    x = jax.random.normal(k1, (B, T_in, 1), dtype=jnp.float32)

    # Deterministic init matching PyTorch default ranges (uniform +-1/sqrt(fan_in)).
    bound_conv = 1.0 / (1 * 3) ** 0.5
    conv_w = jax.random.uniform(k2, (nhid, 1, 3), jnp.float32, -bound_conv, bound_conv)
    conv_b = jax.random.uniform(k3, (nhid,), jnp.float32, -bound_conv, bound_conv)
    bound_mlp = 1.0 / nhid ** 0.5
    mlp_w = jax.random.uniform(k4, (1, nhid), jnp.float32, -bound_mlp, bound_mlp)
    mlp_b = jax.random.uniform(k5, (1,), jnp.float32, -bound_mlp, bound_mlp)

    out = cnn_forward(x, conv_w, conv_b, mlp_w, mlp_b)
    jax.block_until_ready(out)

    ref = ref_forward(x, conv_w, conv_b, mlp_w, mlp_b)
    assert out.shape == (B, T_in - 2, 1), out.shape
    assert jnp.allclose(out, ref, atol=1e-5, rtol=1e-5), "mismatch vs reference"
    print("KERNEL_OK")
</pallas_src>

<mosaic_0001>
module attributes {stable_mosaic.version = 11 : i64} {
  func.func @cnn_mlp_kernel(%arg0: i32, %arg1: memref<8x128xf32, #tpu.memory_space<vmem>>, %arg2: memref<32x3xf32, #tpu.memory_space<vmem>>, %arg3: memref<32x1xf32, #tpu.memory_space<vmem>>, %arg4: memref<32x1xf32, #tpu.memory_space<vmem>>, %arg5: memref<1xf32, #tpu.memory_space<smem>>, %arg6: memref<8x128xf32, #tpu.memory_space<vmem>>) attributes {dimension_semantics = [#tpu.dimension_semantics<parallel>], iteration_bounds = array<i64: 1>, scalar_prefetch = 0 : i64, scratch_operands = 0 : i64, tpu.core_type = #tpu.core_type<tc>, window_params = [{transform_indices = @transform_0, window_bounds = array<i64: 8, 128>}, {pipeline_mode = #tpu.pipeline_mode<synchronous>, transform_indices = @transform_1, window_bounds = array<i64: 32, 3>}, {pipeline_mode = #tpu.pipeline_mode<synchronous>, transform_indices = @transform_2, window_bounds = array<i64: 32, 1>}, {pipeline_mode = #tpu.pipeline_mode<synchronous>, transform_indices = @transform_3, window_bounds = array<i64: 32, 1>}, {transform_indices = @transform_4, window_bounds = array<i64: 1>}, {transform_indices = @transform_5, window_bounds = array<i64: 8, 128>}]} {
    %c0 = arith.constant 0 : index
    %c0_0 = arith.constant 0 : index
    %0 = vector.load %arg1[%c0, %c0_0] : memref<8x128xf32, #tpu.memory_space<vmem>>, vector<8x128xf32>
    %c127_i32 = arith.constant 127 : i32
    %1 = tpu.dynamic_rotate %0 by %c127_i32 dim 1 : vector<8x128xf32>, i32 -> vector<8x128xf32>
    %c126_i32 = arith.constant 126 : i32
    %2 = tpu.dynamic_rotate %0 by %c126_i32 dim 1 : vector<8x128xf32>, i32 -> vector<8x128xf32>
    %c0_1 = arith.constant 0 : index
    %c0_2 = arith.constant 0 : index
    %3 = vector.load %arg2[%c0_1, %c0_2] : memref<32x3xf32, #tpu.memory_space<vmem>>, vector<32x3xf32>
    %c0_3 = arith.constant 0 : index
    %c0_4 = arith.constant 0 : index
    %4 = vector.load %arg3[%c0_3, %c0_4] : memref<32x1xf32, #tpu.memory_space<vmem>>, vector<32x1xf32>
    %c0_5 = arith.constant 0 : index
    %c0_6 = arith.constant 0 : index
    %5 = vector.load %arg4[%c0_5, %c0_6] : memref<32x1xf32, #tpu.memory_space<vmem>>, vector<32x1xf32>
    %6 = vector.extract_strided_slice %3 {offsets = [0, 0], sizes = [32, 1], strides = [1, 1]} : vector<32x3xf32> to vector<32x1xf32>
    %7 = vector.shape_cast %6 : vector<32x1xf32> to vector<1x32x1xf32>
    %8 = vector.shape_cast %0 : vector<8x128xf32> to vector<8x1x128xf32>
    %9 = vector.broadcast %7 : vector<1x32x1xf32> to vector<8x32x128xf32>
    %10 = vector.broadcast %8 : vector<8x1x128xf32> to vector<8x32x128xf32>
    %11 = arith.mulf %9, %10 : vector<8x32x128xf32>
    %12 = vector.extract_strided_slice %3 {offsets = [0, 1], sizes = [32, 1], strides = [1, 1]} : vector<32x3xf32> to vector<32x1xf32>
    %13 = vector.shape_cast %12 : vector<32x1xf32> to vector<1x32x1xf32>
    %14 = vector.shape_cast %1 : vector<8x128xf32> to vector<8x1x128xf32>
    %15 = vector.broadcast %13 : vector<1x32x1xf32> to vector<8x32x128xf32>
    %16 = vector.broadcast %14 : vector<8x1x128xf32> to vector<8x32x128xf32>
    %17 = arith.mulf %15, %16 : vector<8x32x128xf32>
    %18 = arith.addf %11, %17 : vector<8x32x128xf32>
    %19 = vector.extract_strided_slice %3 {offsets = [0, 2], sizes = [32, 1], strides = [1, 1]} : vector<32x3xf32> to vector<32x1xf32>
    %20 = vector.shape_cast %19 : vector<32x1xf32> to vector<1x32x1xf32>
    %21 = vector.shape_cast %2 : vector<8x128xf32> to vector<8x1x128xf32>
    %22 = vector.broadcast %20 : vector<1x32x1xf32> to vector<8x32x128xf32>
    %23 = vector.broadcast %21 : vector<8x1x128xf32> to vector<8x32x128xf32>
    %24 = arith.mulf %22, %23 : vector<8x32x128xf32>
    %25 = arith.addf %18, %24 : vector<8x32x128xf32>
    %26 = vector.shape_cast %4 : vector<32x1xf32> to vector<1x32x1xf32>
    %27 = vector.broadcast %26 : vector<1x32x1xf32> to vector<8x32x128xf32>
    %28 = arith.addf %25, %27 : vector<8x32x128xf32>
    %cst = arith.constant 0.000000e+00 : f32
    %29 = vector.broadcast %cst : f32 to vector<8x32x128xf32>
    %30 = arith.maximumf %28, %29 : vector<8x32x128xf32>
    %31 = vector.shape_cast %5 : vector<32x1xf32> to vector<1x32x1xf32>
    %32 = vector.broadcast %31 : vector<1x32x1xf32> to vector<8x32x128xf32>
    %33 = arith.mulf %30, %32 : vector<8x32x128xf32>
    %cst_7 = arith.constant dense<0.000000e+00> : vector<8x128xf32>
    %34 = vector.multi_reduction <add>, %33, %cst_7 [1] : vector<8x32x128xf32> to vector<8x128xf32>
    %c0_8 = arith.constant 0 : index
    %35 = memref.load %arg5[%c0_8] : memref<1xf32, #tpu.memory_space<smem>>
    %36 = vector.broadcast %35 : f32 to vector<8x128xf32>
    %37 = arith.addf %34, %36 : vector<8x128xf32>
    %c0_9 = arith.constant 0 : index
    %c0_10 = arith.constant 0 : index
    %38 = vector.load %arg6[%c0_9, %c0_10] : memref<8x128xf32, #tpu.memory_space<vmem>>, vector<8x128xf32>
    tpu.vector_store %arg6[%c0_9, %c0_10], %37 {strides = array<i32>} : memref<8x128xf32, #tpu.memory_space<vmem>>, vector<8x128xf32>,
    return
  }
  func.func @transform_0(%arg0: i32) -> (i32, i32) {
    %c0_i32 = arith.constant 0 : i32
    %c0_i32_0 = arith.constant 0 : i32
    return %arg0, %c0_i32 : i32, i32
  }
  func.func @transform_1(%arg0: i32) -> (i32, i32) {
    %c0_i32 = arith.constant 0 : i32
    %c0_i32_0 = arith.constant 0 : i32
    %c0_i32_1 = arith.constant 0 : i32
    return %c0_i32, %c0_i32_0 : i32, i32
  }
  func.func @transform_2(%arg0: i32) -> (i32, i32) {
    %c0_i32 = arith.constant 0 : i32
    %c0_i32_0 = arith.constant 0 : i32
    %c0_i32_1 = arith.constant 0 : i32
    return %c0_i32, %c0_i32_0 : i32, i32
  }
  func.func @transform_3(%arg0: i32) -> (i32, i32) {
    %c0_i32 = arith.constant 0 : i32
    %c0_i32_0 = arith.constant 0 : i32
    %c0_i32_1 = arith.constant 0 : i32
    return %c0_i32, %c0_i32_0 : i32, i32
  }
  func.func @transform_4(%arg0: i32) -> i32 {
    %c0_i32 = arith.constant 0 : i32
    %c0_i32_0 = arith.constant 0 : i32
    return %c0_i32 : i32
  }
  func.func @transform_5(%arg0: i32) -> (i32, i32) {
    %c0_i32 = arith.constant 0 : i32
    %c0_i32_0 = arith.constant 0 : i32
    return %arg0, %c0_i32 : i32, i32
  }
}

</mosaic_0001>

<bundles_post_ra>
// kernel: tpu_custom_call.1
= control target key start
LH: loop header
LB: loop body
LE: loop exit
PB: predicated region body
PF: predicated region fallthrough
CT: control target
= control target key end

     0   :  { %v818_v2 = vmov 0   ;;  %s819_s22 = smov 127   ;;  %v820_v3 = vmov 1   ;;  %s1335_s0 = inlined_call_operand.vmem [shape: f32[8,128], index: 0, kind: input, shape index: {}]   ;;  %s1336_s1 = inlined_call_operand.vmem [shape: f32[32,3], index: 1, kind: input, shape index: {}]   ;;  %s1337_s2 = inlined_call_operand.vmem [shape: f32[32,1], index: 2, kind: input, shape index: {}]   ;;  %s1338_s3 = inlined_call_operand.vmem [shape: f32[32,1], index: 3, kind: input, shape index: {}]   ;;  %s1339_s4 = inlined_call_operand.<no memory space> [shape: f32[1], index: 4, kind: input, shape index: {}]   ;;  %s1340_s5 = inlined_call_operand.hbm [shape: f32[8,128], index: 5, kind: output, shape index: {}]  }
   0x1   :  { %v22_v0 = vld [vmem:[%s1335_s0] sm:$0xff]  ;;  %784 = vset.pattern.permute.xlu1 %v818_v2  ;;  %785 = vset.pattern.permute.xlu0 %v820_v3  ;;  %v28_v4 = vld [vmem:[%s1336_s1 + $0x8] sm:$0xff] }
   0x2   :  { %v27_v1 = vld [vmem:[%s1336_s1] sm:$0xff]  ;;  %23 = vrot.lane.b32.xlu0 %v22_v0, %s819_s22 }
   0x3   :  { %91 = vperm.xlu1 %784, %v27_v1  }
   0x4   :  { %11 = vsyncpa [#allocation4], 0  ;;  %s821_s25 = smov 126   ;;  %v29_v5 = vld [vmem:[%s1336_s1 + $0x10] sm:$0xff]  ;;  %v822_v6 = vmov 2   ;;  %v30_v7 = vld [vmem:[%s1336_s1 + $0x18] sm:$0xff]  ;;  %v44_v18 = vlaneseq  ;;  %v40_v22 = vcombine.high %v22_v0, %v22_v0  ;;  %v940_v58 = vstv %s1339_s4 }
   0x5   :  { %v31_v8 = vld [vmem:[%s1337_s2] sm:$0xff]  ;;  %v34_v9 = vld [vmem:[%s1337_s2 + $0x18] sm:$0xff]  ;;  %v36_v10 = vld [vmem:[%s1338_s3 + $0x8] sm:$0xff]  ;;  %v823_v16 = vmov 1966171168   ;;  %1342 = vst [vmem:[#allocation6_spill] sm:$0xff] %v940_v58 }
   0x6   :  { %25 = vrot.lane.b32.xlu0 %v22_v0, %s821_s25  ;;  %v38_v11 = vld [vmem:[%s1338_s3 + $0x18] sm:$0xff]  ;;  %v32_v12 = vld [vmem:[%s1337_s2 + $0x8] sm:$0xff]  ;;  %v33_v13 = vld [vmem:[%s1337_s2 + $0x10] sm:$0xff]  ;;  %v42_v17 = vunpack.c.l.s4 %v823_v16  ;;  %v45_v20 = vshrl.u32 %v44_v18, 7  ;;  %vm747_vm0 = vcmask 1041409   ;;  %vm749_vm1 = vcmask 1042434  }
   0x7   :  { %96 = vperm.xlu1 %784, %v28_v4   ;;  %v35_v14 = vld [vmem:[%s1338_s3] sm:$0xff]  ;;  %v37_v15 = vld [vmem:[%s1338_s3 + $0x10] sm:$0xff]  ;;  %vm751_vm2 = vcmask 1043459   ;;  %vm753_vm3 = vcmask 1044484   ;;  %vm755_vm4 = vcmask 1045509   ;;  %vm757_vm5 = vcmask 1046534  }
   0x8   :  { %v43_v19 = vunpack.c.0.s8 %v42_v17  ;;  %v902_v31 = vsub.s32 0, %v45_v20  ;;  %s824_s4 = smov [#allocation3]   ;;  %vm759_vm6 = vcmask 1047559  }
   0x9   :  { %s769_s19 = sshll.u32 %s824_s4, 4  ;;  %s770_s19 = int_to_ptr.vmem [resolvable:$true] %s769_s19 }
   0xa   :  { %232 = vperm.xlu0 %785, %v27_v1   ;;  %v894_v21 = vsub.s32 %v43_v19, %v45_v20  ;;  %s796_s20 = scalar_lea.vmem %s770_s19, 128  ;;  %p801_p1 = scmp.lt.s32.totalorder %s770_s19, %s770_s19 }
   0xb   :  { %786 = vset.pattern.permute.xlu1 %v820_v3  ;;  %p797_p0 = scmp.ne.s32.totalorder %s770_s19, %s796_s20  ;;  %p802_p2 = scmp.lt.s32.totalorder %s796_s20, %s796_s20 }
   0xc   :  { %236 = vperm.xlu1 %786, %v28_v4   ;;  %v47_v23 = vrot.slane %v22_v0, %v894_v21  ;;  %v54_v24 = vrot.slane %v40_v22, %v894_v21 }
   0xd   :  { %p803_p3 = por %p802_p2, %p801_p1 }
   0xe   :  { %240 = vperm.xlu0 %785, %v29_v5   ;;  %v55_v25 = vcombine.high %v47_v23, %v47_v23  ;;  %v56_v26 = vcombine.high %v54_v24, %v54_v24  ;;  %v63_v27 = vrot.slane %v47_v23, %v894_v21  ;;  %v70_v28 = vrot.slane %v54_v24, %v894_v21 }
   0xf   :  { %p804_p4 = pnand %p803_p3, %p797_p0 }
  0x10   :  { %787 = vset.pattern.permute.xlu1 %v818_v2  ;;  %v77_v29 = vrot.slane %v55_v25, %v894_v21  ;;  %v84_v30 = vrot.slane %v56_v26, %v894_v21  ;;  %v85_v32 = vcombine.high %v63_v27, %v63_v27  ;;  %v86_v33 = vcombine.high %v70_v28, %v70_v28 }
  0x11   :  { %101 = vperm.xlu1 %787, %v29_v5   ;;  %v906_v39 = vrot.slane %v63_v27, %v902_v31  ;;  %v912_v41 = vrot.slane %v70_v28, %v902_v31 }
  0x12   :  { %789 = vset.pattern.permute.xlu0 %v822_v6  ;;  %v87_v34 = vcombine.high %v77_v29, %v77_v29  ;;  %v88_v35 = vcombine.high %v84_v30, %v84_v30  ;;  %v909_v40 = vrot.slane %v77_v29, %v902_v31  ;;  %v915_v42 = vrot.slane %v85_v32, %v902_v31 }
  0x13   :  { %406 = vperm.xlu0 %789, %v28_v4   ;;  %v923_v47 = vrot.slane %v84_v30, %v902_v31  ;;  %v926_v48 = vrot.slane %v86_v33, %v902_v31 }
  0x14   :  { %v920_v46 = vrot.slane %v87_v34, %v902_v31  ;;  %v929_v49 = vrot.slane %v88_v35, %v902_v31 }
  0x15   :  { %788 = vset.pattern.permute.xlu1 %v822_v6 }
  0x16   :  { %402 = vperm.xlu1 %788, %v27_v1  }
  0x17   :  { %410 = vperm.xlu0 %789, %v29_v5  }
  0x1a   :  { %790 = vset.pattern.permute.xlu1 %v818_v2 }
  0x1b   :  { %106 = vperm.xlu1 %790, %v30_v7   ;;  %793 = vset.pattern.permute.xlu0 %v818_v2 }
  0x1c   :  { %523 = vperm.xlu0 %793, %v31_v8  }
  0x1f   :  { %791 = vset.pattern.permute.xlu1 %v820_v3 }
  0x20   :  { %244 = vperm.xlu1 %791, %v30_v7   ;;  %538 = vperm.xlu0 %793, %v34_v9  }
  0x24   :  { %792 = vset.pattern.permute.xlu1 %v822_v6  ;;  %612 = vperm.xlu0 %793, %v36_v10  }
  0x25   :  { %414 = vperm.xlu1 %792, %v30_v7  }
  0x28   :  { %622 = vperm.xlu0 %793, %v38_v11  }
  0x29   :  { %794 = vset.pattern.permute.xlu1 %v818_v2 }
  0x2a   :  { %528 = vperm.xlu1 %794, %v32_v12  }
  0x2e   :  { %533 = vperm.xlu1 %794, %v33_v13  }
  0x32   :  { %607 = vperm.xlu1 %794, %v35_v14  }
  0x36   :  { %617 = vperm.xlu1 %794, %v37_v15  }
  0x74   :  { %v24_v36 = vpop.permute.xlu0 %23 }
  0x75   :  { %v182_v37 = vcombine.high %v24_v36, %v24_v36  ;;  %v189_v38 = vrot.slane %v24_v36, %v894_v21 }
  0x77   :  { %v196_v43 = vrot.slane %v182_v37, %v894_v21  ;;  %v197_v44 = vcombine.high %v189_v38, %v189_v38  ;;  %v205_v45 = vrot.slane %v189_v38, %v894_v21 }
  0x78   :  { %v26_v50 = vpop.permute.xlu0 %25 }
  0x79   :  { %v198_v51 = vcombine.high %v196_v43, %v196_v43  ;;  %v212_v52 = vrot.slane %v196_v43, %v894_v21  ;;  %v219_v53 = vrot.slane %v197_v44, %v894_v21  ;;  %v227_v54 = vcombine.high %v205_v45, %v205_v45 }
  0x7a   :  { %v934_v55 = vrot.slane %v205_v45, %v902_v31  ;;  %v352_v56 = vcombine.high %v26_v50, %v26_v50  ;;  %v359_v57 = vrot.slane %v26_v50, %v894_v21 }
  0x7b   :  { %v226_v59 = vrot.slane %v198_v51, %v894_v21  ;;  %v228_v60 = vcombine.high %v212_v52, %v212_v52  ;;  %v229_v61 = vcombine.high %v219_v53, %v219_v53  ;;  %v944_v62 = vrot.slane %v219_v53, %v902_v31 }
  0x7c   :  { %v947_v63 = vrot.slane %v227_v54, %v902_v31  ;;  %v950_v0 = vrot.slane %v212_v52, %v902_v31  ;;  %v366_v1 = vrot.slane %v352_v56, %v894_v21  ;;  %v367_v2 = vcombine.high %v359_v57, %v359_v57 }
  0x7d   :  { %v230_v3 = vcombine.high %v226_v59, %v226_v59  ;;  %v954_v4 = vrot.slane %v229_v61, %v902_v31  ;;  %v957_v5 = vrot.slane %v226_v59, %v902_v31  ;;  %v960_v6 = vrot.slane %v228_v60, %v902_v31 }
  0x7e   :  { %v92_v7 = vpop.permute.xlu1 %91  ;;  %v368_v8 = vcombine.high %v366_v1, %v366_v1  ;;  %v375_v9 = vrot.slane %v359_v57, %v894_v21  ;;  %v382_v10 = vrot.slane %v366_v1, %v894_v21  ;;  %v389_v11 = vrot.slane %v367_v2, %v894_v21 }
  0x7f   :  { %v966_v12 = vrot.slane %v230_v3, %v902_v31  ;;  %v149_v13 = vmul.f32 %v906_v39, %v92_v7  ;;  %v153_v14 = vmul.f32 %v909_v40, %v92_v7  ;;  %v157_v15 = vmul.f32 %v915_v42, %v92_v7 }
  0x80   :  { %v161_v16 = vmul.f32 %v920_v46, %v92_v7  ;;  %v165_v17 = vmul.f32 %v912_v41, %v92_v7  ;;  %v169_v18 = vmul.f32 %v923_v47, %v92_v7  ;;  %v173_v19 = vmul.f32 %v926_v48, %v92_v7 }
  0x81   :  { %v177_v20 = vmul.f32 %v929_v49, %v92_v7  ;;  %v396_v22 = vrot.slane %v368_v8, %v894_v21  ;;  %v397_v23 = vcombine.high %v375_v9, %v375_v9  ;;  %v398_v24 = vcombine.high %v382_v10, %v382_v10 }
  0x82   :  { %v399_v25 = vcombine.high %v389_v11, %v389_v11  ;;  %v978_v26 = vrot.slane %v375_v9, %v902_v31  ;;  %v981_v27 = vrot.slane %v389_v11, %v902_v31  ;;  %v984_v28 = vrot.slane %v382_v10, %v902_v31  ;;  %v97_v29 = vpop.permute.xlu1 %96 }
  0x83   :  { %v400_v30 = vcombine.high %v396_v22, %v396_v22  ;;  %v987_v32 = vrot.slane %v397_v23, %v902_v31  ;;  %v990_v33 = vrot.slane %v396_v22, %v902_v31  ;;  %v993_v21 = vrot.slane %v398_v24, %v902_v31 }
  0x84   :  { %v996_v34 = vrot.slane %v399_v25, %v902_v31  ;;  %v150_v35 = vmul.f32 %v906_v39, %v97_v29  ;;  %v154_v36 = vmul.f32 %v909_v40, %v97_v29  ;;  %v158_v37 = vmul.f32 %v915_v42, %v97_v29 }
  0x85   :  { %v1002_v38 = vrot.slane %v400_v30, %v902_v31  ;;  %v162_v43 = vmul.f32 %v920_v46, %v97_v29  ;;  %v166_v44 = vmul.f32 %v912_v41, %v97_v29  ;;  %v170_v45 = vmul.f32 %v923_v47, %v97_v29  ;;  %v233_v50 = vpop.permute.xlu0 %232 }
  0x86   :  { %v174_v51 = vmul.f32 %v926_v48, %v97_v29  ;;  %v178_v52 = vmul.f32 %v929_v49, %v97_v29  ;;  %v287_v53 = vmul.f32 %v934_v55, %v233_v50  ;;  %v291_v54 = vmul.f32 %v944_v62, %v233_v50 }
  0x87   :  { %v295_v56 = vmul.f32 %v947_v63, %v233_v50  ;;  %v299_v31 = vmul.f32 %v954_v4, %v233_v50  ;;  %v303_v57 = vmul.f32 %v950_v0, %v233_v50  ;;  %v307_v59 = vmul.f32 %v957_v5, %v233_v50  ;;  %v237_v60 = vpop.permute.xlu1 %236 }
  0x88   :  { %v311_v61 = vmul.f32 %v960_v6, %v233_v50  ;;  %v315_v1 = vmul.f32 %v966_v12, %v233_v50  ;;  %v1017_v2 = vadd.f32 %v287_v53, %v149_v13  ;;  %v1019_v3 = vadd.f32 %v291_v54, %v153_v14 }
  0x89   :  { %v1021_v7 = vadd.f32 %v295_v56, %v157_v15  ;;  %v1023_v8 = vadd.f32 %v299_v31, %v161_v16  ;;  %v1025_v9 = vadd.f32 %v303_v57, %v165_v17  ;;  %v1027_v10 = vadd.f32 %v307_v59, %v169_v18  ;;  %v241_v11 = vpop.permute.xlu0 %240 }
  0x8a   :  { %v1029_v22 = vadd.f32 %v311_v61, %v173_v19  ;;  %v1031_v23 = vadd.f32 %v315_v1, %v177_v20  ;;  %v288_v24 = vmul.f32 %v934_v55, %v237_v60  ;;  %v292_v13 = vmul.f32 %v944_v62, %v237_v60 }
  0x8b   :  { %v296_v14 = vmul.f32 %v947_v63, %v237_v60  ;;  %v300_v15 = vmul.f32 %v954_v4, %v237_v60  ;;  %v304_v16 = vmul.f32 %v950_v0, %v237_v60  ;;  %v308_v17 = vmul.f32 %v957_v5, %v237_v60 }
  0x8c   :  { %v312_v18 = vmul.f32 %v960_v6, %v237_v60  ;;  %v316_v25 = vmul.f32 %v966_v12, %v237_v60  ;;  %v1041_v19 = vadd.f32 %v288_v24, %v150_v35  ;;  %v1043_v20 = vadd.f32 %v292_v13, %v154_v36  ;;  %v102_v29 = vpop.permute.xlu1 %101 }
  0x8d   :  { %v1045_v30 = vadd.f32 %v296_v14, %v158_v37  ;;  %v1047_v50 = vadd.f32 %v300_v15, %v162_v43  ;;  %v1049_v53 = vadd.f32 %v304_v16, %v166_v44  ;;  %v1051_v54 = vadd.f32 %v308_v17, %v170_v45 }
  0x8e   :  { %v1053_v56 = vadd.f32 %v312_v18, %v174_v51  ;;  %v1055_v31 = vadd.f32 %v316_v25, %v178_v52  ;;  %v289_v57 = vmul.f32 %v934_v55, %v241_v11  ;;  %v293_v35 = vmul.f32 %v944_v62, %v241_v11  ;;  %v407_v44 = vpop.permute.xlu0 %406 }
  0x8f   :  { %1343 = vst [vmem:[#allocation7_spill] sm:$0xff] %v1049_v53  ;;  %1344 = vst [vmem:[#allocation8_spill] sm:$0xff] %v1051_v54  ;;  %v297_v36 = vmul.f32 %v947_v63, %v241_v11  ;;  %v301_v59 = vmul.f32 %v954_v4, %v241_v11  ;;  %v305_v37 = vmul.f32 %v950_v0, %v241_v11 }
  0x90   :  { %1345 = vst [vmem:[#allocation9_spill] sm:$0xff] %v1053_v56  ;;  %1346 = vst [vmem:[#allocation10_spill] sm:$0xff] %v1055_v31  ;;  %v309_v43 = vmul.f32 %v957_v5, %v241_v11  ;;  %v313_v45 = vmul.f32 %v960_v6, %v241_v11  ;;  %v317_v51 = vmul.f32 %v966_v12, %v241_v11 }
  0x91   :  { %v151_v52 = vmul.f32 %v906_v39, %v102_v29  ;;  %v155_v60 = vmul.f32 %v909_v40, %v102_v29  ;;  %v159_v61 = vmul.f32 %v915_v42, %v102_v29  ;;  %v163_v1 = vmul.f32 %v920_v46, %v102_v29  ;;  %v403_v14 = vpop.permute.xlu1 %402 }
  0x92   :  { %v167_v24 = vmul.f32 %v912_v41, %v102_v29  ;;  %v171_v13 = vmul.f32 %v923_v47, %v102_v29  ;;  %v175_v15 = vmul.f32 %v926_v48, %v102_v29  ;;  %v179_v16 = vmul.f32 %v929_v49, %v102_v29 }
  0x93   :  { %v1073_v17 = vadd.f32 %v289_v57, %v151_v52  ;;  %v1075_v11 = vadd.f32 %v293_v35, %v155_v60  ;;  %v1077_v18 = vadd.f32 %v297_v36, %v159_v61  ;;  %v1079_v25 = vadd.f32 %v301_v59, %v163_v1 }
  0x94   :  { %v1081_v58 = vadd.f32 %v305_v37, %v167_v24  ;;  %v1083_v31 = vadd.f32 %v309_v43, %v171_v13  ;;  %v1085_v56 = vadd.f32 %v313_v45, %v175_v15  ;;  %v1087_v54 = vadd.f32 %v317_v51, %v179_v16  ;;  %v411_v37 = vpop.permute.xlu0 %410 }
  0x95   :  { %1347 = vst [vmem:[#allocation11_spill] sm:$0xff] %v1073_v17  ;;  %1348 = vst [vmem:[#allocation12_spill] sm:$0xff] %v1075_v11  ;;  %v1090_v53 = vmul.f32 %v978_v26, %v407_v44  ;;  %v1093_v29 = vmul.f32 %v981_v27, %v407_v44  ;;  %v1096_v57 = vmul.f32 %v987_v32, %v407_v44 }
  0x96   :  { %1349 = vst [vmem:[#allocation13_spill] sm:$0xff] %v1077_v18  ;;  %1350 = vst [vmem:[#allocation14_spill] sm:$0xff] %v1079_v25  ;;  %v1099_v35 = vmul.f32 %v996_v34, %v407_v44  ;;  %v1102_v36 = vmul.f32 %v984_v28, %v407_v44  ;;  %v1105_v59 = vmul.f32 %v990_v33, %v407_v44  ;;  %v107_v60 = vpop.permute.xlu1 %106 }
  0x97   :  { %1351 = vst [vmem:[#allocation15_spill] sm:$0xff] %v1081_v58  ;;  %1352 = vst [vmem:[#allocation16_spill] sm:$0xff] %v1083_v31  ;;  %v1108_v43 = vmul.f32 %v993_v21, %v407_v44  ;;  %v1111_v45 = vmul.f32 %v1002_v38, %v407_v44  ;;  %v457_v51 = vmul.f32 %v978_v26, %v403_v14 }
  0x98   :  { %1353 = vst [vmem:[#allocation17_spill] sm:$0xff] %v1085_v56  ;;  %1354 = vst [vmem:[#allocation18_spill] sm:$0xff] %v1087_v54  ;;  %v461_v52 = vmul.f32 %v981_v27, %v403_v14  ;;  %v465_v61 = vmul.f32 %v987_v32, %v403_v14  ;;  %v469_v1 = vmul.f32 %v996_v34, %v403_v14  ;;  %v524_v17 = vpop.permute.xlu0 %523 }
  0x99   :  { %1355 = vst [vmem:[#allocation19_spill] sm:$0xff] %v1108_v43  ;;  %1356 = vst [vmem:[#allocation20_spill] sm:$0xff] %v1111_v45  ;;  %v473_v24 = vmul.f32 %v984_v28, %v403_v14  ;;  %v477_v13 = vmul.f32 %v990_v33, %v403_v14  ;;  %v481_v15 = vmul.f32 %v993_v21, %v403_v14 }
  0x9a   :  { %v485_v16 = vmul.f32 %v1002_v38, %v403_v14  ;;  %v1122_v44 = vmul.f32 %v978_v26, %v411_v37  ;;  %v1125_v54 = vmul.f32 %v981_v27, %v411_v37  ;;  %v1128_v56 = vmul.f32 %v987_v32, %v411_v37 }
  0x9b   :  { %v1131_v31 = vmul.f32 %v996_v34, %v411_v37  ;;  %v1134_v58 = vmul.f32 %v984_v28, %v411_v37  ;;  %v1137_v25 = vmul.f32 %v990_v33, %v411_v37  ;;  %v1140_v14 = vmul.f32 %v993_v21, %v411_v37 }
  0x9c   :  { %1357 = vst [vmem:[#allocation21_spill] sm:$0xff] %v1122_v44  ;;  %1358 = vst [vmem:[#allocation22_spill] sm:$0xff] %v1125_v54  ;;  %v1143_v18 = vmul.f32 %v1002_v38, %v411_v37  ;;  %v152_v54 = vmul.f32 %v906_v39, %v107_v60  ;;  %v156_v11 = vmul.f32 %v909_v40, %v107_v60 }
  0x9d   :  { %1359 = vst [vmem:[#allocation23_spill] sm:$0xff] %v1128_v56  ;;  %1360 = vst [vmem:[#allocation24_spill] sm:$0xff] %v1131_v31  ;;  %v160_v56 = vmul.f32 %v915_v42, %v107_v60  ;;  %v164_v31 = vmul.f32 %v920_v46, %v107_v60  ;;  %v168_v44 = vmul.f32 %v912_v41, %v107_v60 }
  0x9e   :  { %1361 = vst [vmem:[#allocation25_spill] sm:$0xff] %v1134_v58  ;;  %1362 = vst [vmem:[#allocation26_spill] sm:$0xff] %v1137_v25  ;;  %v172_v58 = vmul.f32 %v923_v47, %v107_v60  ;;  %v245_v25 = vpop.permute.xlu1 %244  ;;  %v176_v45 = vmul.f32 %v926_v48, %v107_v60  ;;  %v489_v37 = vadd.f32 %v457_v51, %v1017_v2 }
  0x9f   :  { %1363 = vst [vmem:[#allocation27_spill] sm:$0xff] %v1140_v14  ;;  %1364 = vst [vmem:[#allocation28_spill] sm:$0xff] %v1143_v18  ;;  %v180_v14 = vmul.f32 %v929_v49, %v107_v60  ;;  %v493_v39 = vadd.f32 %v461_v52, %v1019_v3  ;;  %v497_v40 = vadd.f32 %v465_v61, %v1021_v7 }
  0xa0   :  { %v501_v42 = vadd.f32 %v469_v1, %v1023_v8  ;;  %v505_v46 = vadd.f32 %v473_v24, %v1025_v9  ;;  %v509_v41 = vadd.f32 %v477_v13, %v1027_v10  ;;  %v513_v47 = vadd.f32 %v481_v15, %v1029_v22  ;;  %v539_v1 = vpop.permute.xlu0 %538 }
  0xa1   :  { %v517_v18 = vadd.f32 %v485_v16, %v1031_v23  ;;  %v1161_v43 = vadd.f32 %v524_v17, %v489_v37  ;;  %v1163_v48 = vadd.f32 %v524_v17, %v493_v39  ;;  %v1165_v49 = vadd.f32 %v524_v17, %v497_v40 }
  0xa2   :  { %v1167_v2 = vadd.f32 %v524_v17, %v501_v42  ;;  %v1169_v3 = vadd.f32 %v524_v17, %v505_v46  ;;  %v1171_v7 = vadd.f32 %v524_v17, %v509_v41  ;;  %v1173_v8 = vadd.f32 %v524_v17, %v513_v47  ;;  %v415_v61 = vpop.permute.xlu1 %414 }
  0xa3   :  { %v1175_v9 = vadd.f32 %v524_v17, %v517_v18  ;;  %v573_v10 = vmax.f32 %v1161_v43, 0.0  ;;  %v577_v22 = vmax.f32 %v1163_v48, 0.0  ;;  %v581_v23 = vmax.f32 %v1165_v49, 0.0  ;;  %v1374_v48 = vld [vmem:[#allocation11_spill] sm:$0xff]  ;;  %v1376_v49 = vld [vmem:[#allocation12_spill] sm:$0xff] }
  0xa4   :  { %v585_v51 = vmax.f32 %v1167_v2, 0.0  ;;  %v589_v52 = vmax.f32 %v1169_v3, 0.0  ;;  %v290_v17 = vmul.f32 %v934_v55, %v245_v25  ;;  %v294_v18 = vmul.f32 %v944_v62, %v245_v25  ;;  %v1378_v2 = vld [vmem:[#allocation13_spill] sm:$0xff]  ;;  %v1380_v3 = vld [vmem:[#allocation14_spill] sm:$0xff] }
  0xa5   :  { %v298_v13 = vmul.f32 %v947_v63, %v245_v25  ;;  %v302_v15 = vmul.f32 %v954_v4, %v245_v25  ;;  %v306_v16 = vmul.f32 %v950_v0, %v245_v25  ;;  %v310_v37 = vmul.f32 %v957_v5, %v245_v25 }
  0xa6   :  { %v314_v39 = vmul.f32 %v960_v6, %v245_v25  ;;  %v318_v40 = vmul.f32 %v966_v12, %v245_v25  ;;  %v322_v42 = vadd.f32 %v290_v17, %v152_v54  ;;  %v326_v46 = vadd.f32 %v294_v18, %v156_v11  ;;  %v529_v54 = vpop.permute.xlu1 %528  ;;  %v1367_v11 = vld [vmem:[#allocation9_spill] sm:$0xff] }
  0xa7   :  { %v330_v41 = vadd.f32 %v298_v13, %v160_v56  ;;  %v334_v47 = vadd.f32 %v302_v15, %v164_v31  ;;  %v338_v24 = vadd.f32 %v306_v16, %v168_v44  ;;  %v342_v55 = vadd.f32 %v310_v37, %v172_v58 }
  0xa8   :  { %v346_v62 = vadd.f32 %v314_v39, %v176_v45  ;;  %v350_v60 = vadd.f32 %v318_v40, %v180_v14  ;;  %v460_v63 = vmul.f32 %v978_v26, %v415_v61  ;;  %v464_v4 = vmul.f32 %v981_v27, %v415_v61  ;;  %v1369_v45 = vld [vmem:[#allocation10_spill] sm:$0xff] }
  0xa9   :  { %v468_v0 = vmul.f32 %v987_v32, %v415_v61  ;;  %v472_v5 = vmul.f32 %v996_v34, %v415_v61  ;;  %v476_v6 = vmul.f32 %v984_v28, %v415_v61  ;;  %v480_v12 = vmul.f32 %v990_v33, %v415_v61  ;;  %v1365_v28 = vld [vmem:[#allocation7_spill] sm:$0xff]  ;;  %v1366_v34 = vld [vmem:[#allocation8_spill] sm:$0xff] }
  0xaa   :  { %v484_v56 = vmul.f32 %v993_v21, %v415_v61  ;;  %v488_v58 = vmul.f32 %v1002_v38, %v415_v61  ;;  %v490_v31 = vadd.f32 %v1090_v53, %v1041_v19  ;;  %v494_v26 = vadd.f32 %v1093_v29, %v1043_v20  ;;  %v1368_v38 = vld [vmem:[#allocation19_spill] sm:$0xff]  ;;  %v1370_v19 = vld [vmem:[#allocation20_spill] sm:$0xff]  ;;  %v534_v16 = vpop.permute.xlu1 %533 }
  0xab   :  { %v498_v27 = vadd.f32 %v1096_v57, %v1045_v30  ;;  %v502_v32 = vadd.f32 %v1099_v35, %v1047_v50  ;;  %v506_v33 = vadd.f32 %v1102_v36, %v1365_v28  ;;  %v510_v21 = vadd.f32 %v1105_v59, %v1366_v34  ;;  %v1221_v30 = vpop.permute.xlu0 %612 }
  0xac   :  { %v514_v25 = vadd.f32 %v1368_v38, %v1367_v11  ;;  %v518_v53 = vadd.f32 %v1370_v19, %v1369_v45  ;;  %v1217_v44 = vadd.f32 %v529_v54, %v490_v31  ;;  %v1219_v20 = vadd.f32 %v529_v54, %v494_v26 }
  0xad   :  { %v1223_v29 = vadd.f32 %v529_v54, %v498_v27  ;;  %v1225_v50 = vadd.f32 %v529_v54, %v502_v32  ;;  %v1227_v57 = vadd.f32 %v529_v54, %v506_v33  ;;  %v1229_v35 = vadd.f32 %v529_v54, %v510_v21 }
  0xae   :  { %v1231_v36 = vadd.f32 %v529_v54, %v514_v25  ;;  %v1233_v59 = vadd.f32 %v529_v54, %v518_v53  ;;  %v574_v14 = vmax.f32 %v1217_v44, 0.0  ;;  %v578_v61 = vmax.f32 %v1219_v20, 0.0 }
  0xaf   :  { %v582_v17 = vmax.f32 %v1223_v29, 0.0  ;;  %v586_v18 = vmax.f32 %v1225_v50, 0.0  ;;  %v492_v40 = vadd.f32 %v460_v63, %v322_v42  ;;  %v496_v54 = vadd.f32 %v464_v4, %v326_v46  ;;  %v623_v11 = vpop.permute.xlu0 %622 }
  0xb0   :  { %v500_v31 = vadd.f32 %v468_v0, %v330_v41  ;;  %v504_v26 = vadd.f32 %v472_v5, %v334_v47  ;;  %v508_v27 = vadd.f32 %v476_v6, %v338_v24  ;;  %v512_v32 = vadd.f32 %v480_v12, %v342_v55  ;;  %v608_v47 = vpop.permute.xlu1 %607 }
  0xb1   :  { %v516_v28 = vadd.f32 %v484_v56, %v346_v62  ;;  %v520_v33 = vadd.f32 %v488_v58, %v350_v60  ;;  %v544_v34 = vadd.f32 %v539_v1, %v492_v40  ;;  %v548_v21 = vadd.f32 %v539_v1, %v496_v54 }
  0xb2   :  { %v552_v38 = vadd.f32 %v539_v1, %v500_v31  ;;  %v556_v25 = vadd.f32 %v539_v1, %v504_v26  ;;  %v560_v45 = vadd.f32 %v539_v1, %v508_v27  ;;  %v564_v19 = vadd.f32 %v539_v1, %v512_v32 }
  0xb3   :  { %v568_v53 = vadd.f32 %v539_v1, %v516_v28  ;;  %v572_v15 = vadd.f32 %v539_v1, %v520_v33  ;;  %v576_v37 = vmax.f32 %v544_v34, 0.0  ;;  %v580_v13 = vmax.f32 %v548_v21, 0.0  ;;  %v1383_v28 = vld [vmem:[#allocation25_spill] sm:$0xff]  ;;  %v1385_v34 = vld [vmem:[#allocation26_spill] sm:$0xff] }
  0xb4   :  { %v584_v39 = vmax.f32 %v552_v38, 0.0  ;;  %v588_v42 = vmax.f32 %v556_v25, 0.0  ;;  %v592_v46 = vmax.f32 %v560_v45, 0.0  ;;  %v596_v41 = vmax.f32 %v564_v19, 0.0  ;;  %v1388_v25 = vld [vmem:[#allocation18_spill] sm:$0xff]  ;;  %v1389_v45 = vld [vmem:[#allocation28_spill] sm:$0xff] }
  0xb5   :  { %v600_v24 = vmax.f32 %v568_v53, 0.0  ;;  %v604_v55 = vmax.f32 %v572_v15, 0.0  ;;  %v1243_v62 = vmul.f32 %v623_v11, %v576_v37  ;;  %v1245_v60 = vmul.f32 %v623_v11, %v580_v13 }
  0xb6   :  { %v1247_v63 = vmul.f32 %v623_v11, %v584_v39  ;;  %v1249_v4 = vmul.f32 %v623_v11, %v588_v42  ;;  %v1251_v0 = vmul.f32 %v623_v11, %v592_v46  ;;  %v1253_v1 = vmul.f32 %v623_v11, %v596_v41  ;;  %v618_v46 = vpop.permute.xlu1 %617 }
  0xb7   :  { %v1255_v5 = vmul.f32 %v623_v11, %v600_v24  ;;  %v1257_v6 = vmul.f32 %v623_v11, %v604_v55  ;;  %v625_v12 = vmul.f32 %v608_v47, %v573_v10  ;;  %v629_v56 = vmul.f32 %v608_v47, %v577_v22  ;;  %v1375_v22 = vld [vmem:[#allocation21_spill] sm:$0xff]  ;;  %v1387_v11 = vld [vmem:[#allocation27_spill] sm:$0xff] }
  0xb8   :  { %v633_v58 = vmul.f32 %v608_v47, %v581_v23  ;;  %v637_v13 = vmul.f32 %v608_v47, %v585_v51  ;;  %v641_v15 = vmul.f32 %v608_v47, %v589_v52  ;;  %v1371_v37 = vmax.f32 %v1171_v7, 0.0  ;;  %v1377_v23 = vld [vmem:[#allocation22_spill] sm:$0xff]  ;;  %v1379_v51 = vld [vmem:[#allocation23_spill] sm:$0xff]  ;;  %v1381_v52 = vld [vmem:[#allocation24_spill] sm:$0xff] }
  0xb9   :  { %v1372_v40 = vmax.f32 %v1173_v8, 0.0  ;;  %v1373_v43 = vmax.f32 %v1175_v9, 0.0  ;;  %v491_v31 = vadd.f32 %v1375_v22, %v1374_v48  ;;  %v495_v26 = vadd.f32 %v1377_v23, %v1376_v49  ;;  %v1382_v7 = vld [vmem:[#allocation15_spill] sm:$0xff]  ;;  %v1384_v8 = vld [vmem:[#allocation16_spill] sm:$0xff]  ;;  %v1386_v9 = vld [vmem:[#allocation17_spill] sm:$0xff] }
  0xba   :  { %v645_v39 = vmul.f32 %v608_v47, %v1371_v37  ;;  %v499_v27 = vadd.f32 %v1379_v51, %v1378_v2  ;;  %v503_v32 = vadd.f32 %v1381_v52, %v1380_v3  ;;  %v507_v33 = vadd.f32 %v1383_v28, %v1382_v7 }
  0xbb   :  { %v649_v54 = vmul.f32 %v608_v47, %v1372_v40  ;;  %v653_v10 = vmul.f32 %v608_v47, %v1373_v43  ;;  %v511_v21 = vadd.f32 %v1385_v34, %v1384_v8  ;;  %v515_v38 = vadd.f32 %v1387_v11, %v1386_v9 }
  0xbc   :  { %v519_v19 = vadd.f32 %v1389_v45, %v1388_v25  ;;  %v543_v53 = vadd.f32 %v534_v16, %v491_v31  ;;  %v547_v42 = vadd.f32 %v534_v16, %v495_v26  ;;  %v551_v41 = vadd.f32 %v534_v16, %v499_v27 }
  0xbd   :  { %v555_v47 = vadd.f32 %v534_v16, %v503_v32  ;;  %v559_v24 = vadd.f32 %v534_v16, %v507_v33  ;;  %v563_v55 = vadd.f32 %v534_v16, %v511_v21  ;;  %v567_v37 = vadd.f32 %v534_v16, %v515_v38 }
  0xbe   :  { %v571_v40 = vadd.f32 %v534_v16, %v519_v19  ;;  %v575_v43 = vmax.f32 %v543_v53, 0.0  ;;  %v579_v48 = vmax.f32 %v547_v42, 0.0  ;;  %v583_v22 = vmax.f32 %v551_v41, 0.0 }
  0xbf   :  { %v587_v49 = vmax.f32 %v555_v47, 0.0  ;;  %v591_v23 = vmax.f32 %v559_v24, 0.0  ;;  %v595_v2 = vmax.f32 %v563_v55, 0.0  ;;  %v599_v51 = vmax.f32 %v567_v37, 0.0 }
  0xc0   :  { %v603_v3 = vmax.f32 %v571_v40, 0.0  ;;  %v626_v31 = vmul.f32 %v1221_v30, %v574_v14  ;;  %v627_v26 = vmul.f32 %v618_v46, %v575_v43  ;;  %v630_v27 = vmul.f32 %v1221_v30, %v578_v61 }
  0xc1   :  { %v631_v52 = vmul.f32 %v618_v46, %v579_v48  ;;  %v634_v16 = vmul.f32 %v1221_v30, %v582_v17  ;;  %v635_v32 = vmul.f32 %v618_v46, %v583_v22  ;;  %v638_v7 = vmul.f32 %v1221_v30, %v586_v18 }
  0xc2   :  { %v639_v28 = vmul.f32 %v618_v46, %v587_v49  ;;  %v1390_v44 = vmax.f32 %v1227_v57, 0.0  ;;  %v643_v33 = vmul.f32 %v618_v46, %v591_v23  ;;  %v1391_v20 = vmax.f32 %v1229_v35, 0.0 }
  0xc3   :  { %v647_v8 = vmul.f32 %v618_v46, %v595_v2  ;;  %v1392_v29 = vmax.f32 %v1231_v36, 0.0  ;;  %v651_v34 = vmul.f32 %v618_v46, %v599_v51  ;;  %v655_v21 = vmul.f32 %v618_v46, %v603_v3 }
  0xc4   :  { %v642_v14 = vmul.f32 %v1221_v30, %v1390_v44  ;;  %v646_v61 = vmul.f32 %v1221_v30, %v1391_v20  ;;  %v657_v50 = vadd.f32 %v626_v31, %v625_v12  ;;  %v666_v9 = vadd.f32 %v630_v27, %v629_v56 }
  0xc5   :  { %v650_v17 = vmul.f32 %v1221_v30, %v1392_v29  ;;  %v675_v18 = vadd.f32 %v634_v16, %v633_v58  ;;  %v684_v11 = vadd.f32 %v638_v7, %v637_v13  ;;  %v1393_v35 = vmax.f32 %v1233_v59, 0.0 }
  0xc6   :  { %v693_v38 = vadd.f32 %v642_v14, %v641_v15  ;;  %v702_v57 = vadd.f32 %v646_v61, %v645_v39  ;;  %v658_v45 = vadd.f32 %v657_v50, %v627_v26  ;;  %v667_v19 = vadd.f32 %v666_v9, %v631_v52 }
  0xc7   :  { %v711_v25 = vadd.f32 %v650_v17, %v649_v54  ;;  %v676_v53 = vadd.f32 %v675_v18, %v635_v32  ;;  %v654_v42 = vmul.f32 %v1221_v30, %v1393_v35  ;;  %v685_v41 = vadd.f32 %v684_v11, %v639_v28 }
  0xc8   :  { %v694_v36 = vadd.f32 %v693_v38, %v643_v33  ;;  %v703_v47 = vadd.f32 %v702_v57, %v647_v8  ;;  %v659_v46 = vadd.f32 %v658_v45, %v1243_v62  ;;  %v668_v12 = vadd.f32 %v667_v19, %v1245_v60  ;;  %v1394_v19 = vld [vmem:[#allocation6_spill] sm:$0xff] }
  0xc9   :  { %v712_v24 = vadd.f32 %v711_v25, %v651_v34  ;;  %v677_v56 = vadd.f32 %v676_v53, %v1247_v63  ;;  %v720_v58 = vadd.f32 %v654_v42, %v653_v10  ;;  %v686_v13 = vadd.f32 %v685_v41, %v1249_v4 }
  0xca   :  { %v695_v15 = vadd.f32 %v694_v36, %v1251_v0  ;;  %v704_v39 = vadd.f32 %v703_v47, %v1253_v1  ;;  %v660_v30 = vrot.slane %v659_v46, 4  ;;  %v669_v54 = vrot.slane %v668_v12, 4 }
  0xcb   :  { %v713_v59 = vadd.f32 %v712_v24, %v1255_v5  ;;  %v678_v55 = vrot.slane %v677_v56, 4  ;;  %v721_v37 = vadd.f32 %v720_v58, %v655_v21  ;;  %v687_v40 = vrot.slane %v686_v13, 4 }
  0xcc   :  { %v696_v43 = vrot.slane %v695_v15, 4  ;;  %v705_v62 = vrot.slane %v704_v39, 4  ;;  %v661_v60 = vadd.f32 %v660_v30, %v659_v46  ;;  %v670_v22 = vadd.f32 %v669_v54, %v668_v12 }
  0xcd   :  { %v714_v48 = vrot.slane %v713_v59, 4  ;;  %v679_v63 = vadd.f32 %v678_v55, %v677_v56  ;;  %v722_v10 = vadd.f32 %v721_v37, %v1257_v6  ;;  %v688_v4 = vadd.f32 %v687_v40, %v686_v13 }
  0xce   :  { %v697_v49 = vadd.f32 %v696_v43, %v695_v15  ;;  %v706_v0 = vadd.f32 %v705_v62, %v704_v39  ;;  %v662_v1 = vrot.slane %v661_v60, 2  ;;  %v671_v5 = vrot.slane %v670_v22, 2 }
  0xcf   :  { %v715_v23 = vadd.f32 %v714_v48, %v713_v59  ;;  %v680_v2 = vrot.slane %v679_v63, 2  ;;  %v723_v51 = vrot.slane %v722_v10, 4  ;;  %v689_v3 = vrot.slane %v688_v4, 2 }
  0xd0   :  { %v698_v31 = vrot.slane %v697_v49, 2  ;;  %v707_v26 = vrot.slane %v706_v0, 2  ;;  %v663_v52 = vadd.f32 %v662_v1, %v661_v60  ;;  %v672_v16 = vadd.f32 %v671_v5, %v670_v22 }
  0xd1   :  { %v716_v27 = vrot.slane %v715_v23, 2  ;;  %v681_v32 = vadd.f32 %v680_v2, %v679_v63  ;;  %v724_v7 = vadd.f32 %v723_v51, %v722_v10  ;;  %v690_v28 = vadd.f32 %v689_v3, %v688_v4 }
  0xd2   :  { %v699_v44 = vadd.f32 %v698_v31, %v697_v49  ;;  %v708_v6 = vadd.f32 %v707_v26, %v706_v0  ;;  %v664_v33 = vrot.slane %v663_v52, 1  ;;  %v673_v20 = vrot.slane %v672_v16, 1 }
  0xd3   :  { %v717_v14 = vadd.f32 %v716_v27, %v715_v23  ;;  %v682_v61 = vrot.slane %v681_v32, 1  ;;  %v725_v8 = vrot.slane %v724_v7, 2  ;;  %v691_v29 = vrot.slane %v690_v28, 1 }
  0xd4   :  { %v700_v17 = vrot.slane %v699_v44, 1  ;;  %v709_v34 = vrot.slane %v708_v6, 1  ;;  %v665_v50 = vadd.f32 %v664_v33, %v663_v52  ;;  %v674_v9 = vadd.f32 %v673_v20, %v672_v16 }
  0xd5   :  { %v718_v21 = vrot.slane %v717_v14, 1  ;;  %v683_v18 = vadd.f32 %v682_v61, %v681_v32  ;;  %v726_v11 = vadd.f32 %v725_v8, %v724_v7  ;;  %v692_v38 = vadd.f32 %v691_v29, %v690_v28 }
  0xd6   :  { %v701_v57 = vadd.f32 %v700_v17, %v699_v44  ;;  %v710_v25 = vadd.f32 %v709_v34, %v708_v6  ;;  %v731_v53 = vadd.f32 %v1394_v19, %v665_v50  ;;  %v732_v35 = vadd.f32 %v1394_v19, %v674_v9 }
  0xd7   :  { %v727_v45 = vrot.slane %v726_v11, 1  ;;  %v733_v42 = vadd.f32 %v1394_v19, %v683_v18  ;;  %v719_v41 = vadd.f32 %v718_v21, %v717_v14  ;;  %v734_v47 = vadd.f32 %v1394_v19, %v692_v38 }
  0xd8   :  { %v748_v24 = vsel %vm747_vm0, %v732_v35, %v731_v53  ;;  %v735_v46 = vadd.f32 %v1394_v19, %v701_v57  ;;  %v736_v56 = vadd.f32 %v1394_v19, %v710_v25 }
  0xd9   :  { %v728_v36 = vadd.f32 %v727_v45, %v726_v11  ;;  %v750_v12 = vsel %vm749_vm1, %v733_v42, %v748_v24  ;;  %v737_v13 = vadd.f32 %v1394_v19, %v719_v41 }
  0xda   :  { %v752_v58 = vsel %vm751_vm2, %v734_v47, %v750_v12 }
  0xdb   :  { %v754_v15 = vsel %vm753_vm3, %v735_v46, %v752_v58  ;;  %v738_v39 = vadd.f32 %v1394_v19, %v728_v36 }
  0xdc   :  { %v756_v59 = vsel %vm755_vm4, %v736_v56, %v754_v15 }
  0xdd   :  { %v758_v30 = vsel %vm757_vm5, %v737_v13, %v756_v59 }
  0xde   :  { %v760_v54 = vsel %vm759_vm6, %v738_v39, %v758_v30 }
  0xdf   :  { %762 = vst [vmem:[#allocation3] sm:$0xff] %v760_v54 }
  0xe0   :  { %807 = shalt.err (!%p804_p4)
}
  0xe1   :  { %772 = dma.vmem_to_hbm [thread:$0]  %s770_s19, 128, %s1340_s5, [#allocation4]  }
  0xe2   :  { %816 = dma.done.wait [#allocation4], 128  }
  0xe3   :  { %817 = vsyncadd [#allocation4], 4294967168 }
  0xe4   :  { %776 = vsyncpa [#allocation4], 1 }

</bundles_post_ra>
